<compile_context>
chip_gen: v7x
topology: tpu7x:2x2x1
jax: 0.10.0
libtpu: 0.0.40
codegen_flags: <defaults>
</compile_context>

<pallas_src>
import functools

import jax
import jax.numpy as jnp
from jax.experimental import pallas as pl
from jax.experimental.pallas import tpu as pltpu


# ---------------------------------------------------------------------------
# Pallas kernel: 3x3 conv (stride 1, pad 1) on a block of B images.
# ---------------------------------------------------------------------------
def _conv3x3_kernel(x_ref, w_ref, b_ref, o_ref, xpad_ref, patch_ref, *, H, W):
    # x_ref    : (B, Cin, H*W)      bf16  channel-major images, flat spatial
    # w_ref    : (Cout, 9*Cin)      bf16  flattened weights (tap-major, then Cin)
    # b_ref    : (Cout, 1)          f32   bias
    # o_ref    : (1, Cout, B*Hp*W)  f32   output in H-padded row coordinates
    # xpad_ref : (Cin, B*Hp*W)      f32   H-padded, flattened activations (scratch)
    # patch_ref: (9*Cin, B*Hp*W)    f32   im2col matrix (scratch)
    B, Cin, HW = x_ref.shape
    Hp = H + 2
    HpW = Hp * W
    L = B * HpW

    # --- Stage the B images into the H-padded scratch (pad rows stay zero). ---
    xpad_ref[...] = jnp.zeros_like(xpad_ref)
    for b in range(B):                                  # static, unrolled
        start = b * HpW + W                             # skip the top pad row
        xpad_ref[:, start:start + HW] = x_ref[b].astype(xpad_ref.dtype)

    # --- im2col: each tap (kh, kw) is a constant lane rotation of the flat  ---
    # image.  For padded flat index m = b*Hp*W + h*W + w the tap value is
    # xpad[m + (kh-1)*W + (kw-1)]; h overflow lands on the zero pad rows,
    # w overflow is masked to zero.  Rolls run on the XLU, masks on the VPU.
    xp = xpad_ref[...]
    w_pos = jax.lax.broadcasted_iota(jnp.int32, (Cin, L), 1) % W
    for kh in range(3):
        for kw in range(3):
            dh, dw = kh - 1, kw - 1
            tap = kh * 3 + kw
            shift = (-(dh * W + dw)) % L
            shifted = pltpu.roll(xp, shift=shift, axis=1) if shift else xp
            if dw == -1:
                shifted = jnp.where(w_pos >= 1, shifted, 0.0)
            elif dw == 1:
                shifted = jnp.where(w_pos <= W - 2, shifted, 0.0)
            patch_ref[tap * Cin:(tap + 1) * Cin, :] = shifted

    # --- One lane-dense MXU matmul: K = 9*Cin, N = B*Hp*W, f32 accumulation. --
    acc = jnp.dot(w_ref[...], patch_ref[...].astype(w_ref.dtype),
                  preferred_element_type=jnp.float32)
    o_ref[0] = (acc + b_ref[...]).astype(o_ref.dtype)


def _pick_block_images(num_images, per_image_bytes, vmem_budget_bytes=16 << 20):
    """Largest divisor of num_images that fits the VMEM budget while keeping
    the grid length >= 2 (so both v7x TensorCores get work)."""
    best = 1
    for b in range(1, num_images + 1):
        if num_images % b:
            continue
        if b * per_image_bytes > vmem_budget_bytes:
            continue
        if num_images // b >= 2 or num_images == 1:
            best = b
    return best


def _conv2d_3x3_pallas(x_nchw, weight_oihw, bias):
    """3x3 / stride 1 / pad 1 conv. x: [N, Cin, H, W] -> [N, Cout, H, W]."""
    N, Cin, H, W = x_nchw.shape
    Cout = weight_oihw.shape[0]
    Hp, HW, HpW = H + 2, H * W, (H + 2) * W

    # bf16 operands in HBM / on the MXU (accumulation stays f32).
    x_flat = x_nchw.reshape(N, Cin, HW).astype(jnp.bfloat16)
    # OIHW -> (Cout, kh, kw, Cin) -> (Cout, 9*Cin), matching the im2col row order.
    w_flat = jnp.transpose(weight_oihw, (0, 2, 3, 1)).reshape(Cout, 9 * Cin)
    w_flat = w_flat.astype(jnp.bfloat16)
    b_col = bias.reshape(Cout, 1).astype(jnp.float32)

    # Images per grid step: double-buffered in/out blocks + scratches in VMEM.
    per_image = (2 * Cin * HW * 2          # bf16 input block (double-buffered)
                 + 2 * Cout * HpW * 4      # f32 output block (double-buffered)
                 + Cin * HpW * 4           # f32 padded staging scratch
                 + 9 * Cin * HpW * 4)      # f32 im2col scratch
    B = _pick_block_images(N, per_image)
    G = N // B
    # TODO(synk): for large H*W*Cin add H-strip tiling with a 2-row halo so one
    # block also fits v7x's 64 MiB VMEM; unnecessary at these shapes.

    kernel = functools.partial(_conv3x3_kernel, H=H, W=W)
    out_pad = pl.pallas_call(
        kernel,
        out_shape=jax.ShapeDtypeStruct((G, Cout, B * HpW), jnp.float32),
        grid_spec=pltpu.PrefetchScalarGridSpec(
            num_scalar_prefetch=0,
            grid=(G,),
            in_specs=[
                pl.BlockSpec((B, Cin, HW), lambda g: (g, 0, 0)),
                # Constant index maps: weights/bias are fetched once, not per step.
                pl.BlockSpec((Cout, 9 * Cin), lambda g: (0, 0)),
                pl.BlockSpec((Cout, 1), lambda g: (0, 0)),
            ],
            out_specs=pl.BlockSpec((1, Cout, B * HpW), lambda g: (g, 0, 0)),
            scratch_shapes=[
                pltpu.VMEM((Cin, B * HpW), jnp.float32),
                pltpu.VMEM((9 * Cin, B * HpW), jnp.float32),
            ],
        ),
        compiler_params=pltpu.CompilerParams(
            dimension_semantics=("parallel",),
        ),
    )(x_flat, w_flat, b_col)

    # (G, Cout, B*Hp*W) -> drop the pad rows -> NCHW.
    out = out_pad.reshape(G, Cout, B, Hp, W)
    out = jnp.transpose(out, (0, 2, 1, 3, 4)).reshape(N, Cout, Hp, W)
    return out[:, :, 1:H + 1, :].astype(x_nchw.dtype)


# ---------------------------------------------------------------------------
# SpikeConv forward
# ---------------------------------------------------------------------------
def spike_conv_forward(x, weight, bias, *, spiking, step):
    """
    spiking=False: x [N, Cin, H, W]       -> conv(x)            [N, Cout, H, W]
    spiking=True : x [step, N, Cin, H, W] -> stack over steps   [step, N, Cout, H, W]
    """
    if not spiking:
        return _conv2d_3x3_pallas(x, weight, bias)
    T, N, Cin, H, W = x.shape
    assert T == step
    # Fold (time, batch) into one image axis; identical to the torch loop+stack.
    out = _conv2d_3x3_pallas(x.reshape(T * N, Cin, H, W), weight, bias)
    return out.reshape(T, N, weight.shape[0], H, W)


if __name__ == "__main__":
    # Deterministic synthetic parameters (Conv2d(4, 8, 3, padding=1, bias=True)).
    key = jax.random.PRNGKey(0)
    k_x, k_w, k_b = jax.random.split(key, 3)

    STEP, BATCH, CIN, COUT, H, W = 2, 2, 4, 8, 16, 16

    weight = jax.random.normal(k_w, (COUT, CIN, 3, 3), jnp.float32) * 0.1
    bias = jax.random.normal(k_b, (COUT,), jnp.float32) * 0.1
    x = jax.random.normal(k_x, (STEP, BATCH, CIN, H, W), jnp.float32)

    # Spiking-mode forward: [step, N, Cin, H, W] -> [step, N, Cout, H, W].
    out = spike_conv_forward(x, weight, bias, spiking=True, step=STEP)
    out = jax.block_until_ready(out)
    assert out.shape == (STEP, BATCH, COUT, H, W)

    # Reference: same bf16 rounding of the operands, f32 accumulation.
    x_bf = x.astype(jnp.bfloat16).astype(jnp.float32)
    w_bf = weight.astype(jnp.bfloat16).astype(jnp.float32)
    ref = jnp.stack(
        [
            jax.lax.conv_general_dilated(
                x_bf[t], w_bf, window_strides=(1, 1), padding=((1, 1), (1, 1)),
                dimension_numbers=("NCHW", "OIHW", "NCHW"),
            )
            + bias.reshape(1, COUT, 1, 1)
            for t in range(STEP)
        ]
    )
    assert jnp.allclose(out, ref, atol=2e-3, rtol=2e-3), float(
        jnp.max(jnp.abs(out - ref)))

    # Non-spiking mode: plain conv on [N, Cin, H, W].
    out2 = spike_conv_forward(x[0], weight, bias, spiking=False, step=STEP)
    out2 = jax.block_until_ready(out2)
    assert out2.shape == (BATCH, COUT, H, W)
    assert jnp.allclose(out2, ref[0], atol=2e-3, rtol=2e-3)

    print("KERNEL_OK")
</pallas_src>

<mosaic_0001>
module attributes {stable_mosaic.version = 11 : i64} {
  func.func @_conv3x3_kernel(%arg0: i32, %arg1: memref<2x4x256xbf16, #tpu.memory_space<vmem>>, %arg2: memref<8x36xbf16, #tpu.memory_space<vmem>>, %arg3: memref<8x1xf32, #tpu.memory_space<vmem>>, %arg4: memref<1x8x576xf32, #tpu.memory_space<vmem>>, %arg5: memref<4x576xf32, #tpu.memory_space<vmem>>, %arg6: memref<36x576xf32, #tpu.memory_space<vmem>>) attributes {dimension_semantics = [#tpu.dimension_semantics<parallel>], iteration_bounds = array<i64: 2>, scalar_prefetch = 0 : i64, scratch_operands = 2 : i64, tpu.core_type = #tpu.core_type<tc>, window_params = [{transform_indices = @transform_0, window_bounds = array<i64: 2, 4, 256>}, {pipeline_mode = #tpu.pipeline_mode<synchronous>, transform_indices = @transform_1, window_bounds = array<i64: 8, 36>}, {pipeline_mode = #tpu.pipeline_mode<synchronous>, transform_indices = @transform_2, window_bounds = array<i64: 8, 1>}, {transform_indices = @transform_3, window_bounds = array<i64: 1, 8, 576>}]} {
    %cst = arith.constant 0.000000e+00 : f32
    %0 = vector.broadcast %cst : f32 to vector<4x576xf32>
    %c0 = arith.constant 0 : index
    %c0_0 = arith.constant 0 : index
    %1 = vector.load %arg5[%c0, %c0_0] : memref<4x576xf32, #tpu.memory_space<vmem>>, vector<4x576xf32>
    tpu.vector_store %arg5[%c0, %c0_0], %0 {strides = array<i32>} : memref<4x576xf32, #tpu.memory_space<vmem>>, vector<4x576xf32>,
    %c0_1 = arith.constant 0 : index
    %c0_2 = arith.constant 0 : index
    %c0_3 = arith.constant 0 : index
    %2 = vector.load %arg1[%c0_1, %c0_2, %c0_3] : memref<2x4x256xbf16, #tpu.memory_space<vmem>>, vector<1x4x256xbf16>
    %3 = vector.shape_cast %2 : vector<1x4x256xbf16> to vector<4x256xbf16>
    %4 = arith.extf %3 : vector<4x256xbf16> to vector<4x256xf32>
    %c0_4 = arith.constant 0 : index
    %c16 = arith.constant 16 : index
    %5 = vector.load %arg5[%c0_4, %c16] : memref<4x576xf32, #tpu.memory_space<vmem>>, vector<4x256xf32>
    tpu.vector_store %arg5[%c0_4, %c16], %4 {strides = array<i32>} : memref<4x576xf32, #tpu.memory_space<vmem>>, vector<4x256xf32>,
    %c1 = arith.constant 1 : index
    %c0_5 = arith.constant 0 : index
    %c0_6 = arith.constant 0 : index
    %6 = vector.load %arg1[%c1, %c0_5, %c0_6] : memref<2x4x256xbf16, #tpu.memory_space<vmem>>, vector<1x4x256xbf16>
    %7 = vector.shape_cast %6 : vector<1x4x256xbf16> to vector<4x256xbf16>
    %8 = arith.extf %7 : vector<4x256xbf16> to vector<4x256xf32>
    %c0_7 = arith.constant 0 : index
    %c304 = arith.constant 304 : index
    %9 = vector.load %arg5[%c0_7, %c304] : memref<4x576xf32, #tpu.memory_space<vmem>>, vector<4x256xf32>
    tpu.vector_store %arg5[%c0_7, %c304], %8 {strides = array<i32>} : memref<4x576xf32, #tpu.memory_space<vmem>>, vector<4x256xf32>,
    %c0_8 = arith.constant 0 : index
    %c0_9 = arith.constant 0 : index
    %10 = vector.load %arg5[%c0_8, %c0_9] : memref<4x576xf32, #tpu.memory_space<vmem>>, vector<4x576xf32>
    %11 = tpu.iota {dimensions = array<i32: 1>} : vector<4x576xi32>
    %c16_i32 = arith.constant 16 : i32
    %c0_i32 = arith.constant 0 : i32
    %12 = arith.cmpi eq, %c16_i32, %c0_i32 : i32
    %c1_i32 = arith.constant 1 : i32
    %13 = arith.select %12, %c1_i32, %c16_i32 : i32
    %14 = vector.broadcast %13 : i32 to vector<4x576xi32>
    %15 = arith.remsi %11, %14 : vector<4x576xi32>
    %c0_i32_10 = arith.constant 0 : i32
    %16 = vector.broadcast %c0_i32_10 : i32 to vector<4x576xi32>
    %17 = arith.cmpi ne, %15, %16 : vector<4x576xi32>
    %c0_i32_11 = arith.constant 0 : i32
    %18 = vector.broadcast %c0_i32_11 : i32 to vector<4x576xi32>
    %19 = arith.cmpi slt, %15, %18 : vector<4x576xi32>
    %c0_i32_12 = arith.constant 0 : i32
    %20 = arith.cmpi slt, %13, %c0_i32_12 : i32
    %21 = vector.broadcast %20 : i1 to vector<4x576xi1>
    %22 = vector.broadcast %21 : vector<4x576xi1> to vector<4x576xi1>
    %23 = arith.xori %19, %22 : vector<4x576xi1>
    %24 = arith.andi %23, %17 : vector<4x576xi1>
    %25 = vector.broadcast %13 : i32 to vector<4x576xi32>
    %26 = arith.addi %15, %25 : vector<4x576xi32>
    %27 = arith.select %24, %26, %15 : vector<4x576xi1>, vector<4x576xi32>
    %c17_i32 = arith.constant 17 : i32
    %28 = tpu.dynamic_rotate %10 by %c17_i32 dim 1 : vector<4x576xf32>, i32 -> vector<4x576xf32>
    %c1_i32_13 = arith.constant 1 : i32
    %29 = vector.broadcast %c1_i32_13 : i32 to vector<4x576xi32>
    %30 = arith.cmpi sge, %27, %29 : vector<4x576xi32>
    %cst_14 = arith.constant 0.000000e+00 : f32
    %31 = vector.broadcast %cst_14 : f32 to vector<4x576xf32>
    %32 = arith.select %30, %28, %31 : vector<4x576xi1>, vector<4x576xf32>
    %c0_15 = arith.constant 0 : index
    %c0_16 = arith.constant 0 : index
    %33 = vector.load %arg6[%c0_15, %c0_16] : memref<36x576xf32, #tpu.memory_space<vmem>>, vector<4x576xf32>
    tpu.vector_store %arg6[%c0_15, %c0_16], %32 {strides = array<i32>} : memref<36x576xf32, #tpu.memory_space<vmem>>, vector<4x576xf32>,
    %c16_i32_17 = arith.constant 16 : i32
    %34 = tpu.dynamic_rotate %10 by %c16_i32_17 dim 1 : vector<4x576xf32>, i32 -> vector<4x576xf32>
    %c4 = arith.constant 4 : index
    %c0_18 = arith.constant 0 : index
    %35 = vector.load %arg6[%c4, %c0_18] : memref<36x576xf32, #tpu.memory_space<vmem>>, vector<4x576xf32>
    tpu.vector_store %arg6[%c4, %c0_18], %34 {strides = array<i32>} : memref<36x576xf32, #tpu.memory_space<vmem>>, vector<4x576xf32>,
    %c15_i32 = arith.constant 15 : i32
    %36 = tpu.dynamic_rotate %10 by %c15_i32 dim 1 : vector<4x576xf32>, i32 -> vector<4x576xf32>
    %c14_i32 = arith.constant 14 : i32
    %37 = vector.broadcast %c14_i32 : i32 to vector<4x576xi32>
    %38 = arith.cmpi sle, %27, %37 : vector<4x576xi32>
    %cst_19 = arith.constant 0.000000e+00 : f32
    %39 = vector.broadcast %cst_19 : f32 to vector<4x576xf32>
    %40 = arith.select %38, %36, %39 : vector<4x576xi1>, vector<4x576xf32>
    %c8 = arith.constant 8 : index
    %c0_20 = arith.constant 0 : index
    %41 = vector.load %arg6[%c8, %c0_20] : memref<36x576xf32, #tpu.memory_space<vmem>>, vector<4x576xf32>
    tpu.vector_store %arg6[%c8, %c0_20], %40 {strides = array<i32>} : memref<36x576xf32, #tpu.memory_space<vmem>>, vector<4x576xf32>,
    %c1_i32_21 = arith.constant 1 : i32
    %42 = tpu.dynamic_rotate %10 by %c1_i32_21 dim 1 : vector<4x576xf32>, i32 -> vector<4x576xf32>
    %c1_i32_22 = arith.constant 1 : i32
    %43 = vector.broadcast %c1_i32_22 : i32 to vector<4x576xi32>
    %44 = arith.cmpi sge, %27, %43 : vector<4x576xi32>
    %cst_23 = arith.constant 0.000000e+00 : f32
    %45 = vector.broadcast %cst_23 : f32 to vector<4x576xf32>
    %46 = arith.select %44, %42, %45 : vector<4x576xi1>, vector<4x576xf32>
    %c12 = arith.constant 12 : index
    %c0_24 = arith.constant 0 : index
    %47 = vector.load %arg6[%c12, %c0_24] : memref<36x576xf32, #tpu.memory_space<vmem>>, vector<4x576xf32>
    tpu.vector_store %arg6[%c12, %c0_24], %46 {strides = array<i32>} : memref<36x576xf32, #tpu.memory_space<vmem>>, vector<4x576xf32>,
    %c16_25 = arith.constant 16 : index
    %c0_26 = arith.constant 0 : index
    %48 = vector.load %arg6[%c16_25, %c0_26] : memref<36x576xf32, #tpu.memory_space<vmem>>, vector<4x576xf32>
    tpu.vector_store %arg6[%c16_25, %c0_26], %10 {strides = array<i32>} : memref<36x576xf32, #tpu.memory_space<vmem>>, vector<4x576xf32>,
    %c575_i32 = arith.constant 575 : i32
    %49 = tpu.dynamic_rotate %10 by %c575_i32 dim 1 : vector<4x576xf32>, i32 -> vector<4x576xf32>
    %c14_i32_27 = arith.constant 14 : i32
    %50 = vector.broadcast %c14_i32_27 : i32 to vector<4x576xi32>
    %51 = arith.cmpi sle, %27, %50 : vector<4x576xi32>
    %cst_28 = arith.constant 0.000000e+00 : f32
    %52 = vector.broadcast %cst_28 : f32 to vector<4x576xf32>
    %53 = arith.select %51, %49, %52 : vector<4x576xi1>, vector<4x576xf32>
    %c20 = arith.constant 20 : index
    %c0_29 = arith.constant 0 : index
    %54 = vector.load %arg6[%c20, %c0_29] : memref<36x576xf32, #tpu.memory_space<vmem>>, vector<4x576xf32>
    tpu.vector_store %arg6[%c20, %c0_29], %53 {strides = array<i32>} : memref<36x576xf32, #tpu.memory_space<vmem>>, vector<4x576xf32>,
    %c561_i32 = arith.constant 561 : i32
    %55 = tpu.dynamic_rotate %10 by %c561_i32 dim 1 : vector<4x576xf32>, i32 -> vector<4x576xf32>
    %c1_i32_30 = arith.constant 1 : i32
    %56 = vector.broadcast %c1_i32_30 : i32 to vector<4x576xi32>
    %57 = arith.cmpi sge, %27, %56 : vector<4x576xi32>
    %cst_31 = arith.constant 0.000000e+00 : f32
    %58 = vector.broadcast %cst_31 : f32 to vector<4x576xf32>
    %59 = arith.select %57, %55, %58 : vector<4x576xi1>, vector<4x576xf32>
    %c24 = arith.constant 24 : index
    %c0_32 = arith.constant 0 : index
    %60 = vector.load %arg6[%c24, %c0_32] : memref<36x576xf32, #tpu.memory_space<vmem>>, vector<4x576xf32>
    tpu.vector_store %arg6[%c24, %c0_32], %59 {strides = array<i32>} : memref<36x576xf32, #tpu.memory_space<vmem>>, vector<4x576xf32>,
    %c560_i32 = arith.constant 560 : i32
    %61 = tpu.dynamic_rotate %10 by %c560_i32 dim 1 : vector<4x576xf32>, i32 -> vector<4x576xf32>
    %c28 = arith.constant 28 : index
    %c0_33 = arith.constant 0 : index
    %62 = vector.load %arg6[%c28, %c0_33] : memref<36x576xf32, #tpu.memory_space<vmem>>, vector<4x576xf32>
    tpu.vector_store %arg6[%c28, %c0_33], %61 {strides = array<i32>} : memref<36x576xf32, #tpu.memory_space<vmem>>, vector<4x576xf32>,
    %c559_i32 = arith.constant 559 : i32
    %63 = tpu.dynamic_rotate %10 by %c559_i32 dim 1 : vector<4x576xf32>, i32 -> vector<4x576xf32>
    %c14_i32_34 = arith.constant 14 : i32
    %64 = vector.broadcast %c14_i32_34 : i32 to vector<4x576xi32>
    %65 = arith.cmpi sle, %27, %64 : vector<4x576xi32>
    %cst_35 = arith.constant 0.000000e+00 : f32
    %66 = vector.broadcast %cst_35 : f32 to vector<4x576xf32>
    %67 = arith.select %65, %63, %66 : vector<4x576xi1>, vector<4x576xf32>
    %c32 = arith.constant 32 : index
    %c0_36 = arith.constant 0 : index
    %68 = vector.load %arg6[%c32, %c0_36] : memref<36x576xf32, #tpu.memory_space<vmem>>, vector<4x576xf32>
    tpu.vector_store %arg6[%c32, %c0_36], %67 {strides = array<i32>} : memref<36x576xf32, #tpu.memory_space<vmem>>, vector<4x576xf32>,
    %c0_37 = arith.constant 0 : index
    %c0_38 = arith.constant 0 : index
    %69 = vector.load %arg2[%c0_37, %c0_38] : memref<8x36xbf16, #tpu.memory_space<vmem>>, vector<8x36xbf16>
    %c0_39 = arith.constant 0 : index
    %c0_40 = arith.constant 0 : index
    %70 = vector.load %arg6[%c0_39, %c0_40] : memref<36x576xf32, #tpu.memory_space<vmem>>, vector<36x576xf32>
    %71 = arith.truncf %70 : vector<36x576xf32> to vector<36x576xbf16>
    %cst_41 = arith.constant dense<0.000000e+00> : vector<8x576xf32>
    %72 = tpu.matmul %69, %71, %cst_41 {dimension_numbers = #tpu.dot_dimension_numbers<[1], [0], [0], [1], [0, 0, 1, 1], [], []>} : vector<8x36xbf16>, vector<36x576xbf16>, vector<8x576xf32> -> vector<8x576xf32>
    %c0_42 = arith.constant 0 : index
    %c0_43 = arith.constant 0 : index
    %73 = vector.load %arg3[%c0_42, %c0_43] : memref<8x1xf32, #tpu.memory_space<vmem>>, vector<8x1xf32>
    %74 = vector.broadcast %73 : vector<8x1xf32> to vector<8x576xf32>
    %75 = arith.addf %72, %74 : vector<8x576xf32>
    %c0_44 = arith.constant 0 : index
    %c0_45 = arith.constant 0 : index
    %c0_46 = arith.constant 0 : index
    %76 = vector.load %arg4[%c0_44, %c0_45, %c0_46] : memref<1x8x576xf32, #tpu.memory_space<vmem>>, vector<1x8x576xf32>
    %77 = vector.shape_cast %76 : vector<1x8x576xf32> to vector<8x576xf32>
    %78 = vector.shape_cast %75 : vector<8x576xf32> to vector<1x8x576xf32>
    tpu.vector_store %arg4[%c0_44, %c0_45, %c0_46], %78 {strides = array<i32>} : memref<1x8x576xf32, #tpu.memory_space<vmem>>, vector<1x8x576xf32>,
    return
  }
  func.func @transform_0(%arg0: i32) -> (i32, i32, i32) {
    %c0_i32 = arith.constant 0 : i32
    %c0_i32_0 = arith.constant 0 : i32
    %c0_i32_1 = arith.constant 0 : i32
    return %arg0, %c0_i32, %c0_i32_0 : i32, i32, i32
  }
  func.func @transform_1(%arg0: i32) -> (i32, i32) {
    %c0_i32 = arith.constant 0 : i32
    %c0_i32_0 = arith.constant 0 : i32
    %c0_i32_1 = arith.constant 0 : i32
    return %c0_i32, %c0_i32_0 : i32, i32
  }
  func.func @transform_2(%arg0: i32) -> (i32, i32) {
    %c0_i32 = arith.constant 0 : i32
    %c0_i32_0 = arith.constant 0 : i32
    %c0_i32_1 = arith.constant 0 : i32
    return %c0_i32, %c0_i32_0 : i32, i32
  }
  func.func @transform_3(%arg0: i32) -> (i32, i32, i32) {
    %c0_i32 = arith.constant 0 : i32
    %c0_i32_0 = arith.constant 0 : i32
    %c0_i32_1 = arith.constant 0 : i32
    return %arg0, %c0_i32, %c0_i32_0 : i32, i32, i32
  }
}

</mosaic_0001>

<bundles_post_ra>
// kernel: tpu_custom_call.1
= control target key start
LH: loop header
LB: loop body
LE: loop exit
PB: predicated region body
PF: predicated region fallthrough
CT: control target
= control target key end

     0   :  { %8 = vsyncpa [#allocation5], 0  ;;  %s1574_s0 = inlined_call_operand.hbm [shape: bf16[4,4,256], index: 0, kind: input, shape index: {}]   ;;  %s1575_s1 = inlined_call_operand.vmem [shape: bf16[8,36], index: 1, kind: input, shape index: {}]   ;;  %s1576_s2 = inlined_call_operand.vmem [shape: f32[8,1], index: 2, kind: input, shape index: {}]   ;;  %s1577_s3 = inlined_call_operand.hbm [shape: f32[2,8,576], index: 3, kind: output, shape index: {}]  }
   0x1   :  { %10 = vsyncpa [#allocation5 + $0x1], 0 }
   0x2   :  { %11 = vsyncpa [#allocation6], 0 }
   0x3   :  { %13 = vsyncpa [#allocation6 + $0x1], 0  ;;  %s1127_s12 = smov 0   ;;  %s1129_s13 = smov 0  }
   0x4   :  { %s1131_s14 = smov 0   ;;  %s1133_s15 = smov 0  }
   0x5 LB: > { %s1148_s16 = sadd.s32 4294967295, %s1087_s15   ;;  %s889_s17 = sadd.s32 4294967294, %s1087_s15   ;;  %s1087_s15 = sphi %s1133_s15, %s1610_s15   ;;  %s1083_s14 = sphi %s1131_s14, %s1609_s14   ;;  %s1079_s13 = sphi %s1129_s13, %s1608_s13   ;;  %s1075_s12 = sphi %s1127_s12, %s1607_s12  }
   0x6   : > { %s1152_s18 = sadd.s32 1, %s1087_s15   ;;  %s26_s19 = sadd.s32 1, %s1083_s14 }
   0x7   : > { %s23_s20 = ssub.s32 %s1087_s15, %s1152_s18  ;;  %p33_p0 = scmp.ne.s32.totalorder %s1083_s14, %s1079_s13 }
   0x8   : > { %p24_p1 = scmp.eq.s32.totalorder %s23_s20, 0  ;;  %p34_p2 = scmp.eq.s32.totalorder %s1087_s15, 0 }
   0x9   : > { %p39_p3 = scmp.ne.s32.totalorder %s1079_s13, %s1075_s12  ;;  %p40_p4 = scmp.eq.s32.totalorder %s1148_s16, 0 }
   0xa   : > { %s1164_s21 = scalar_select %p24_p1, %s1083_s14, %s26_s19  }
   0xb   : > { %p1166_p5 = por %p34_p2, %p33_p0  ;;  %p1170_p6 = por %p40_p4, %p39_p3 }
   0xc   : > { %p105_p7 = scmp.eq.s32.totalorder %s1148_s16, 1  ;;  %p111_p8 = scmp.eq.s32.totalorder %s889_s17, 1 }
   0xd   : > { %p937_p10 = scmp.lt.s32.totalorder %s1087_s15, 2  ;;  %s137_s26 = sand.u32 1, %s1083_s14  }
   0xe   : > { %p1177_p11 = por %p105_p7, %p33_p0  ;;  %p1181_p12 = por %p111_p8, %p39_p3 }
   0xf   : > { %s908_s27 = sshll.u32 %s1087_s15, 7  ;;  %s892_s28 = sshll.u32 %s137_s26, 3 }
  0x10   : > { %s1581_s24 = scalar_select %p1177_p11, 1, 0 }
  0x11   : > { %s1582_s25 = scalar_select %p1181_p12, 1, 0 }
  0x12   : > { %s1190_s4 = scalar_lea.hbm %s1574_s0, %s908_s27  ;;  %s141_s5 = scalar_lea.vmem [#allocation4], %s892_s28 }
  0x13   : > { %s149_s6 = sshll.u32 %s141_s5, 4  ;;  %p1194_p13 = pnand %p937_p10, %p1166_p5  ;;  %s1198_s6 = int_to_ptr.vmem [resolvable:$true] %s149_s6 }
  0x14   : > { %s1200_s8 = scalar_lea.sflag [#allocation5], %s137_s26  ;;  %s991_s9 = scalar_lea.hbm %s1190_s4, 128 }
  0x15   : > { %p992_p0 = scmp.ne.s32.totalorder %s1190_s4, %s991_s9  ;;  %p993_p1 = pneg %p1194_p13 }
  0x16   : > { %s996_s17 = scalar_lea.hbm %s1574_s0, 256  ;;  %p997_p4 = scmp.lt.u32.totalorder %s1190_s4, %s1574_s0 }
  0x17   : > { %p994_p2 = pnand %p993_p1, %p992_p0  ;;  %p998_p5 = scmp.lt.u32.totalorder %s996_s17, %s991_s9 }
  0x18   : > { %p1000_p8 = scmp.lt.u32.totalorder %s991_s9, %s1190_s4 }
  0x19   : > { %p995_p3 = pneg %p994_p2  ;;  %p999_p7 = por %p998_p5, %p997_p4 }
  0x1b   : > { %p1001_p10 = por %p1000_p8, %p999_p7 }
  0x1d   : > { %p1002_p9 = pnand %p1001_p10, %p995_p3 }
  0x1f   : > { %1005 = shalt.err (!%p1002_p9)
}
  0x20   : > { %s1006_s22 = scalar_lea.vmem %s1198_s6, 128  ;;  %s1089_s26 = smov [#allocation4]  }
  0x21   : > { %p1007_p0 = scmp.ne.s32.totalorder %s1198_s6, %s1006_s22  ;;  %s1011_s27 = sshll.u32 %s1089_s26, 4  ;;  %s1012_s27 = int_to_ptr.vmem [resolvable:$false] %s1011_s27 }
  0x22   : > { %s1013_s28 = scalar_lea.vmem %s1012_s27, 256  ;;  %p1014_p11 = scmp.lt.s32.totalorder %s1198_s6, %s1012_s27 }
  0x23   : > { %p1009_p2 = pnand %p1007_p0, %p993_p1  ;;  %p1015_p4 = scmp.lt.s32.totalorder %s1013_s28, %s1006_s22 }
  0x25   : > { %p1010_p12 = pneg %p1009_p2  ;;  %p1016_p5 = por %p1015_p4, %p1014_p11 }
  0x27   : > { %p1017_p7 = pnand %p1016_p5, %p1010_p12 }
  0x29   : > { %1020 = shalt.err (!%p1017_p7)
}
  0x2a   : > { %s1090_s29 = smov 64   ;;  %s1091_s30 = smov 4  }
  0x2b   : > { %932 = dma.hbm_to_vmem [thread:$0]  (!%p1194_p13), %s1190_s4, 128, %s1198_s6, %s1200_s8, %s1090_s29, %s1090_s29, %s1091_s30  }
  0x2c   : > { %p896_p9 = scmp.ge.s32.totalorder %s1087_s15, 1  ;;  %p157_p1 = scmp.lt.s32.totalorder %s1087_s15, 3 }
  0x2e   : > { %p158_p3 = pnand %p896_p9, %p157_p1 }
  0x2f   : > { %s1231_s5 = sand.u32 (!%p158_p3), 1, %s1079_s13  }
  0x30   : > { %161 = sbr.rel (%p158_p3) target bundleno = 797 (0x31d), region = 32  ;;  %s897_s9 = sshll.u32 (!%p158_p3), %s1231_s5, 3 }
  0x31   : > { %s164_s10 = scalar_lea.sflag (!%p158_p3), [#allocation5], %s1231_s5  ;;  %s167_s11 = scalar_lea.vmem (!%p158_p3), [#allocation4], %s897_s9 }
  0x37   : > { %1066 = dma.done.wait (%p1170_p6), %s164_s10, 128  }
  0x38   : > { %1068 = vsyncadd (%p1170_p6), %s164_s10, 4294967168  ;;  %v1092_v0 = vmov 0.0   ;;  %vm194_vm0 = vcmask 519168   ;;  %v196_v1 = vld [vmem:[%s167_s11] sm:$0xff]   ;;  %s1093_s4 = smov 16   ;;  %s1094_s6 = smov 48   ;;  %v231_v16 = vlaneseq }
  0x39   : > { %192 = vst [vmem:[#allocation2] sm:$0xff] %v1092_v0  ;;  %193 = vst [vmem:[#allocation2 + $0x8] sm:$0xff] %v1092_v0  ;;  %v197_v2 = vunpack.c.l.bf16 %v196_v1  ;;  %v214_v3 = vunpack.c.h.bf16 %v196_v1  ;;  %vm206_vm1 = vcmask 1043584   ;;  %vm207_vm2 = vcmask 1047556   ;;  %s1095_s23 = smov 64   ;;  %s1096_s7 = smov 127  }
  0x3a   : > { %195 = vst.msk [vmem:[#allocation2 + $0x10] sm:$0xf] %vm194_vm0, %v1092_v0  ;;  %vm202_vm3 = vcmask 130048   ;;  %vm210_vm4 = vcmask 125952   ;;  %vm208_vm5 = vmor %vm207_vm2, %vm206_vm1  ;;  %vm223_vm6 = vcmask 1043840   ;;  %vm219_vm7 = vcmask 392192  }
  0x3b   : > { %199 = vrot.lane.b32.xlu0 %v197_v2, %s1093_s4  ;;  %vm226_vm8 = vcmask 388096   ;;  %vm224_vm9 = vmor %vm207_vm2, %vm223_vm6  ;;  %s1097_s8 = smov 113   ;;  %s1098_s17 = smov 112   ;;  %vm303_vm10 = vcmask 1048064   ;;  %v1260_v17 = vand.u32 127, %v231_v16  ;;  %vm530_vm11 = vcmask 924672  }
  0x3c   : > { %s1099_s19 = smov 111   ;;  %s1100_s20 = smov 65   ;;  %vm485_vm13 = vcmask 1039360   ;;  %vm564_vm1 = vcmask 916480  }
  0x3d   : > { %v233_v20 = vadd.s32 128, %v1260_v17  ;;  %s1101_s22 = smov 79   ;;  %s1102_s26 = smov 81   ;;  %v241_v34 = vand.u32 15, %v1260_v17 }
  0x3e   : > { %s1103_s27 = smov 80   ;;  %s923_s10 = smul.u32 40, %s1231_s5 }
  0x3f   : > { %216 = vrot.lane.b32.xlu0 %v214_v3, %s1094_s6  ;;  %v248_v23 = vand.u32 15, %v233_v20  ;;  %vm1295_vm14 = vcmp.le.s32.totalorder %v241_v34, 14  ;;  %vm1338_vm2 = vcmp.ge.s32.totalorder %v241_v34, 1  ;;  %s924_s4 = smul.u32 640, %s1148_s16  ;;  %s805_s16 = scalar_lea.sflag [#allocation6], %s1231_s5 }
  0x40   : > { %s189_s11 = scalar_lea.vmem [#allocation7], %s923_s10  ;;  %p1604_p11 = scmp.ne.s32.totalorder %s1581_s24, 0 }
  0x41   : > { %vm1278_vm12 = vcmp.ge.s32.totalorder %v248_v23, 1  ;;  %vm1299_vm15 = vcmp.le.s32.totalorder %v248_v23, 14  ;;  %s819_s6 = sshll.u32 %s189_s11, 4  ;;  %s1532_s6 = int_to_ptr.vmem [resolvable:$true] %s819_s6 }
  0xad   : > { %v200_v4 = vpop.permute.xlu0 %199 }
  0xae   : > { %v201_v5 = vrot.slane %v200_v4, 4 }
  0xb0   : > { %v203_v6 = vsel %vm202_vm3, %v201_v5, %v200_v4  ;;  %211 = vst.msk [vmem:[#allocation2 + $0x8] sm:$0xf] %vm210_vm4, %v201_v5  ;;  %vm435_vm3 = vcmask 531456   ;;  %vm589_vm4 = vcmask 908288   ;;  %v1104_v4 = vmov 0  }
  0xb1   : > { %209 = vst.msk [vmem:[#allocation2] sm:$0xff] %vm208_vm5, %v203_v6  ;;  %v217_v7 = vpop.permute.xlu0 %216  ;;  %708 = vmatprep.mubr.bf16.mxu0 %v1104_v4  ;;  %749 = vmatprep.mubr.bf16.mxu1 %v1104_v4  ;;  %vm339_vm5 = vcmask 662528  }
  0xb2   : > { %v218_v8 = vrot.slane %v217_v7, 4  ;;  %987 = vset.pattern.permute.xlu1 %v1104_v4  ;;  %988 = vset.pattern.permute.xlu0 %v1104_v4 }
  0xb4   : > { %v220_v9 = vsel %vm219_vm7, %v218_v8, %v217_v7  ;;  %227 = vst.msk [vmem:[#allocation2 + $0x10] sm:$0xf] %vm226_vm8, %v218_v8  ;;  %vm405_vm7 = vcmask 646144  }
  0xb5   : > { %225 = vst.msk [vmem:[#allocation2 + $0x8] sm:$0xff] %vm224_vm9, %v220_v9  ;;  %vm374_vm9 = vcmask 654336  }
  0xb8   : > { %v228_v10 = vld [vmem:[#allocation2] sm:$0xff] }
  0xb9   : > { %304 = vrot.lane.b32.xlu1 %v228_v10, %s1095_s23  ;;  %470 = vst [vmem:[#allocation3 + $0x50] sm:$0xf] %v228_v10  ;;  %v299_v11 = vcombine.high %v228_v10, %v228_v10  ;;  %v550_v15 = vrot.slane %v228_v10, 4 }
  0xbb   : > { %471 = vst [vmem:[#allocation3 + $0x58] sm:$0xf] %v299_v11  ;;  %v230_v12 = vld [vmem:[#allocation2 + $0x10] sm:$0xf] }
  0xbc   : > { %v229_v13 = vld [vmem:[#allocation2 + $0x8] sm:$0xff]  ;;  %474 = vst.msk [vmem:[#allocation3 + $0x70] sm:$0xf] %vm194_vm0, %v230_v12 }
  0xbd   : > { %309 = vrot.lane.b32.xlu0 %v229_v13, %s1095_s23  ;;  %472 = vst [vmem:[#allocation3 + $0x60] sm:$0xf] %v229_v13  ;;  %475 = vrot.lane.b32.xlu1 %v228_v10, %s1096_s7  ;;  %v1247_v14 = vcombine.high %v229_v13, %v229_v13  ;;  %v552_v26 = vrot.slane %v229_v13, 4 }
  0xbf   : > { %473 = vst [vmem:[#allocation3 + $0x68] sm:$0xf] %v1247_v14 }
  0xc1   : > { %479 = vrot.lane.b32.xlu0 %v229_v13, %s1096_s7  ;;  %307 = vrot.lane.b32.xlu1 %v299_v11, %s1095_s23 }
  0xc5   : > { %522 = vrot.lane.b32.xlu0 %v299_v11, %s1097_s8  ;;  %524 = vrot.lane.b32.xlu1 %v229_v13, %s1097_s8 }
  0xc9   : > { %311 = vrot.lane.b32.xlu1 %v1247_v14, %s1095_s23 }
  0xcd   : > { %477 = vrot.lane.b32.xlu1 %v299_v11, %s1096_s7 }
  0xd1   : > { %556 = vrot.lane.b32.xlu1 %v299_v11, %s1098_s17 }
  0xd5   : > { %554 = vrot.lane.b32.xlu1 %v550_v15, %s1098_s17 }
  0xd9   : > { %581 = vrot.lane.b32.xlu1 %v299_v11, %s1099_s19  ;;  %v234_v11 = vadd.s32 256, %v1260_v17 }
  0xdb   : > { %v255_v16 = vand.u32 15, %v234_v11 }
  0xdd   : > { %vm1372_vm6 = vcmp.ge.s32.totalorder %v255_v16, 1  ;;  %vm1392_vm8 = vcmp.le.s32.totalorder %v255_v16, 14 }
 0x12b   : > { %v305_v18 = vpop.permute.xlu1 %304 }
 0x12c   : > { %v1263_v19 = vsel %vm303_vm10, %v305_v18, %v230_v12 }
 0x12d   : > { %313 = vrot.lane.b32.xlu0 %v1263_v19, %s1095_s23  ;;  %425 = vrot.lane.b32.xlu1 %v1263_v19, %s1100_s20  ;;  %v359_v50 = vrot.slane %v1263_v19, 4 }
 0x12f   : > { %v310_v21 = vpop.permute.xlu0 %309  ;;  %v476_v22 = vpop.permute.xlu1 %475 }
 0x131   : > { %520 = vrot.lane.b32.xlu0 %v228_v10, %s1097_s8  ;;  %395 = vrot.lane.b32.xlu1 %v1263_v19, %s1101_s22 }
 0x133   : > { %v1273_v24 = vpop.permute.xlu0 %479  ;;  %v308_v25 = vpop.permute.xlu1 %307 }
 0x134   : > { %v315_v27 = vsel %vm303_vm10, %v308_v25, %v305_v18  ;;  %v316_v31 = vsel %vm303_vm10, %v310_v21, %v308_v25 }
 0x135   : > { %558 = vrot.lane.b32.xlu0 %v552_v26, %s1098_s17  ;;  %427 = vrot.lane.b32.xlu1 %v315_v27, %s1100_s20  ;;  %v360_v49 = vrot.slane %v315_v27, 4  ;;  %v361_v52 = vrot.slane %v316_v31, 4 }
 0x137   : > { %v523_v29 = vpop.permute.xlu0 %522  ;;  %v1282_v30 = vpop.permute.xlu1 %524 }
 0x138   : > { %v532_v32 = vsel %vm530_vm11, %v523_v29, %v1282_v30 }
 0x139   : > { %v541_v33 = vsel %vm1278_vm12, %v532_v32, 0.0  ;;  %579 = vrot.lane.b32.xlu0 %v228_v10, %s1099_s19  ;;  %333 = vrot.lane.b32.xlu1 %v316_v31, %s1102_s26 }
 0x13a   : > { %546 = vst [vmem:[#allocation3 + $0x80] sm:$0xf] %v541_v33 }
 0x13b   : > { %v312_v35 = vpop.permute.xlu1 %311 }
 0x13c   : > { %v317_v36 = vsel %vm303_vm10, %v312_v35, %v310_v21 }
 0x13d   : > { %583 = vrot.lane.b32.xlu0 %v229_v13, %s1099_s19  ;;  %399 = vrot.lane.b32.xlu1 %v316_v31, %s1101_s22  ;;  %v362_v51 = vrot.slane %v317_v36, 4 }
 0x13f   : > { %v478_v39 = vpop.permute.xlu1 %477 }
 0x140   : > { %v486_v40 = vsel %vm485_vm13, %v476_v22, %v478_v39  ;;  %v487_v41 = vsel %vm485_vm13, %v478_v39, %v1273_v24 }
 0x141   : > { %v495_v42 = vsel %vm1295_vm14, %v486_v40, 0.0  ;;  %v496_v43 = vsel %vm1299_vm15, %v487_v41, 0.0  ;;  %329 = vrot.lane.b32.xlu0 %v1263_v19, %s1102_s26  ;;  %431 = vrot.lane.b32.xlu1 %v317_v36, %s1100_s20 }
 0x142   : > { %v505_v44 = vrot.slane %v495_v42, 4  ;;  %v506_v45 = vrot.slane %v496_v43, 4 }
 0x143   : > { %v557_v46 = vpop.permute.xlu1 %556 }
 0x144   : > { %515 = vst [vmem:[#allocation3 + $0x50] sm:$0xf0] %v505_v44  ;;  %516 = vst [vmem:[#allocation3 + $0x58] sm:$0xf0] %v506_v45 }
 0x145   : > { %429 = vrot.lane.b32.xlu0 %v316_v31, %s1100_s20  ;;  %335 = vrot.lane.b32.xlu1 %v317_v36, %s1102_s26 }
 0x147   : > { %v555_v47 = vpop.permute.xlu1 %554 }
 0x148   : > { %v565_v48 = vsel %vm564_vm1, %v555_v47, %v557_v46  ;;  %v235_v47 = vadd.s32 384, %v1260_v17 }
 0x149   : > { %574 = vst [vmem:[#allocation3 + $0x78] sm:$0xf0] %v565_v48  ;;  %331 = vrot.lane.b32.xlu0 %v315_v27, %s1102_s26  ;;  %401 = vrot.lane.b32.xlu1 %v317_v36, %s1101_s22 }
 0x14b   : > { %v582_v53 = vpop.permute.xlu1 %581 }
 0x14d   : > { %397 = vrot.lane.b32.xlu0 %v315_v27, %s1101_s22  ;;  %366 = vrot.lane.b32.xlu1 %v360_v49, %s1103_s27 }
 0x151   : > { %364 = vrot.lane.b32.xlu0 %v359_v50, %s1103_s27  ;;  %481 = vrot.lane.b32.xlu1 %v1247_v14, %s1096_s7 }
 0x155   : > { %483 = vrot.lane.b32.xlu0 %v1263_v19, %s1096_s7  ;;  %526 = vrot.lane.b32.xlu1 %v1247_v14, %s1097_s8 }
 0x159   : > { %528 = vrot.lane.b32.xlu0 %v1263_v19, %s1097_s8  ;;  %370 = vrot.lane.b32.xlu1 %v362_v51, %s1103_s27  ;;  %s1530_s8 = scalar_lea.hbm %s1577_s3, %s924_s4 }
 0x15d   : > { %368 = vrot.lane.b32.xlu0 %v361_v52, %s1103_s27  ;;  %560 = vrot.lane.b32.xlu1 %v1247_v14, %s1098_s17 }
 0x161   : > { %585 = vrot.lane.b32.xlu1 %v1247_v14, %s1099_s19 }
 0x19f   : > { %v314_v54 = vpop.permute.xlu0 %313  ;;  %v426_v55 = vpop.permute.xlu1 %425 }
 0x1a0   : > { %v318_v56 = vsel %vm303_vm10, %v314_v54, %v312_v35  ;;  %v262_v54 = vand.u32 15, %v235_v47 }
 0x1a1   : > { %433 = vrot.lane.b32.xlu0 %v318_v56, %s1100_s20  ;;  %v363_v8 = vrot.slane %v318_v56, 4 }
 0x1a3   : > { %v521_v58 = vpop.permute.xlu0 %520  ;;  %v1342_v59 = vpop.permute.xlu1 %395 }
 0x1a4   : > { %v531_v60 = vsel %vm530_vm11, %v521_v58, %v523_v29 }
 0x1a5   : > { %v540_v61 = vsel %vm1338_vm2, %v531_v60, 0.0  ;;  %337 = vrot.lane.b32.xlu0 %v318_v56, %s1102_s26 }
 0x1a6   : > { %545 = vst [vmem:[#allocation3 + $0x78] sm:$0xf] %v540_v61 }
 0x1a7   : > { %v1348_v62 = vpop.permute.xlu0 %558  ;;  %v428_v63 = vpop.permute.xlu1 %427 }
 0x1a8   : > { %v566_v1 = vsel %vm564_vm1, %v557_v46, %v1348_v62  ;;  %v436_v2 = vsel %vm435_vm3, %v426_v55, %v428_v63  ;;  %v236_v46 = vadd.s32 512, %v1260_v17 }
 0x1a9   : > { %575 = vst [vmem:[#allocation3 + $0x80] sm:$0xf0] %v566_v1  ;;  %v445_v3 = vsel %vm1338_vm2, %v436_v2, 0.0  ;;  %403 = vrot.lane.b32.xlu0 %v318_v56, %s1101_s22 }
 0x1aa   : > { %v455_v5 = vrot.slane %v445_v3, 4 }
 0x1ab   : > { %v580_v6 = vpop.permute.xlu0 %579  ;;  %v334_v7 = vpop.permute.xlu1 %333 }
 0x1ac   : > { %465 = vst [vmem:[#allocation3 + $0x28] sm:$0xf0] %v455_v5  ;;  %v590_v9 = vsel %vm589_vm4, %v580_v6, %v582_v53 }
 0x1ad   : > { %v599_v10 = vsel %vm1295_vm14, %v590_v9, 0.0  ;;  %372 = vrot.lane.b32.xlu0 %v363_v8, %s1103_s27 }
 0x1ae   : > { %604 = vst [vmem:[#allocation3 + $0xa0] sm:$0xf] %v599_v10 }
 0x1af   : > { %v1361_v12 = vpop.permute.xlu0 %583  ;;  %v400_v13 = vpop.permute.xlu1 %399 }
 0x1b0   : > { %v591_v14 = vsel %vm589_vm4, %v582_v53, %v1361_v12  ;;  %v269_v53 = vand.u32 15, %v236_v46 }
 0x1b1   : > { %v600_v15 = vsel %vm1299_vm15, %v591_v14, 0.0  ;;  %562 = vrot.lane.b32.xlu0 %v359_v50, %s1098_s17  ;;  %s1021_s17 = scalar_lea.vmem %s1532_s6, 640 }
 0x1b2   : > { %605 = vst [vmem:[#allocation3 + $0xa8] sm:$0xf] %v600_v15  ;;  %vm1422_vm10 = vcmp.le.s32.totalorder %v269_v53, 14  ;;  %p1022_p6 = scmp.ne.s32.totalorder %s1532_s6, %s1021_s17 }
 0x1b3   : > { %v330_v18 = vpop.permute.xlu0 %329  ;;  %v1368_v20 = vpop.permute.xlu1 %431 }
 0x1b4   : > { %p1023_p12 = pnand %p1022_p6, %p1604_p11 }
 0x1b5   : > { %587 = vrot.lane.b32.xlu0 %v1263_v19, %s1099_s19  ;;  %v650_v19 = vld [vmem:[%s1576_s2] sm:$0xff]  ;;  %s1106_s19 = smov [#allocation7]  }
 0x1b6   : > { %653 = vperm.xlu1 %987, %v650_v19   ;;  %p1024_p13 = pneg %p1023_p12  ;;  %s1025_s20 = sshll.u32 %s1106_s19, 4  ;;  %s1026_s20 = int_to_ptr.vmem [resolvable:$false] %s1025_s20 }
 0x1b7   : > { %v430_v22 = vpop.permute.xlu0 %429  ;;  %v1376_v23 = vpop.permute.xlu1 %335  ;;  %s1027_s22 = scalar_lea.vmem %s1026_s20, 1280  ;;  %p1028_p8 = scmp.lt.s32.totalorder %s1532_s6, %s1026_s20 }
 0x1b8   : > { %v437_v25 = vsel %vm435_vm3, %v428_v63, %v430_v22  ;;  %v438_v26 = vsel %vm435_vm3, %v430_v22, %v1368_v20  ;;  %v342_v27 = vsel %vm339_vm5, %v334_v7, %v1376_v23  ;;  %p1029_p10 = scmp.lt.s32.totalorder %s1027_s22, %s1021_s17 }
 0x1b9   : > { %v446_v29 = vsel %vm1278_vm12, %v437_v25, 0.0  ;;  %v447_v31 = vsel %vm1372_vm6, %v438_v26, 0.0  ;;  %v351_v32 = vsel %vm1372_vm6, %v342_v27, 0.0 }
 0x1ba   : > { %v456_v33 = vrot.slane %v446_v29, 4  ;;  %v457_v34 = vrot.slane %v447_v31, 4  ;;  %356 = vst [vmem:[#allocation3 + $0x10] sm:$0xf] %v351_v32  ;;  %v626_v29 = vld [vmem:[#allocation3 + $0x80] sm:$0xff]  ;;  %p1030_p0 = por %p1029_p10, %p1028_p8 }
 0x1bb   : > { %v332_v36 = vpop.permute.xlu0 %331  ;;  %v1396_v39 = vpop.permute.xlu1 %401 }
 0x1bc   : > { %466 = vst [vmem:[#allocation3 + $0x30] sm:$0xf0] %v456_v33  ;;  %467 = vst [vmem:[#allocation3 + $0x38] sm:$0xf0] %v457_v34  ;;  %v340_v40 = vsel %vm339_vm5, %v330_v18, %v332_v36  ;;  %v341_v41 = vsel %vm339_vm5, %v332_v36, %v334_v7  ;;  %v408_v42 = vsel %vm405_vm7, %v400_v13, %v1396_v39  ;;  %v621_v33 = vld [vmem:[#allocation3 + $0x58] sm:$0xff]  ;;  %p1031_p2 = pnand %p1030_p0, %p1024_p13 }
 0x1bd   : > { %v349_v43 = vsel %vm1338_vm2, %v340_v40, 0.0  ;;  %v350_v44 = vsel %vm1278_vm12, %v341_v41, 0.0  ;;  %v417_v45 = vsel %vm1392_vm8, %v408_v42, 0.0  ;;  %vm1426_vm12 = vcmp.le.s32.totalorder %v262_v54, 14  ;;  %v625_v36 = vld [vmem:[#allocation3 + $0x78] sm:$0xff] }
 0x1be   : > { %354 = vst [vmem:[#allocation3] sm:$0xf] %v349_v43  ;;  %355 = vst [vmem:[#allocation3 + $0x8] sm:$0xf] %v350_v44  ;;  %v641_v34 = vpack.c.bf16 %v626_v29, %v621_v33  ;;  %v631_v40 = vld [vmem:[#allocation3 + $0xa8] sm:$0xf] }
 0x1bf   : > { %422 = vst [vmem:[#allocation3 + $0x38] sm:$0xf] %v417_v45  ;;  %v398_v48 = vpop.permute.xlu0 %397  ;;  %v367_v49 = vpop.permute.xlu1 %366  ;;  %v630_v41 = vld [vmem:[#allocation3 + $0xa0] sm:$0xf]  ;;  %v646_v35 = vpack.c.bf16 %v631_v40, %v631_v40  ;;  %v1476_v45 = vld [vmem:[%s1575_s1] sm:$0xf] }
 0x1c0   : > { %v406_v50 = vsel %vm405_vm7, %v1342_v59, %v398_v48  ;;  %v407_v51 = vsel %vm405_vm7, %v398_v48, %v400_v13  ;;  %v645_v43 = vpack.c.bf16 %v630_v41, %v630_v41  ;;  %vm656_vm2 = vcmask 293888  }
 0x1c1   : > { %v415_v28 = vsel %vm1295_vm14, %v406_v50, 0.0  ;;  %v416_v52 = vsel %vm1299_vm15, %v407_v51, 0.0  ;;  %vm388_vm14 = vcmask 523268   ;;  %vm1439_vm15 = vcmp.ge.s32.totalorder %v269_v53, 1 }
 0x1c2   : > { %420 = vst [vmem:[#allocation3 + $0x28] sm:$0xf] %v415_v28  ;;  %421 = vst [vmem:[#allocation3 + $0x30] sm:$0xf] %v416_v52 }
 0x1c3   : > { %v365_v55 = vpop.permute.xlu0 %364  ;;  %v482_v17 = vpop.permute.xlu1 %481 }
 0x1c4   : > { %v375_v56 = vsel %vm374_vm9, %v365_v55, %v367_v49  ;;  %v488_v57 = vsel %vm485_vm13, %v1273_v24, %v482_v17 }
 0x1c5   : > { %384 = vst [vmem:[#allocation3] sm:$0xf0] %v375_v56  ;;  %v497_v37 = vsel %vm1392_vm8, %v488_v57, 0.0 }
 0x1c6   : > { %v507_v38 = vrot.slane %v497_v37, 4  ;;  %v617_v7 = vld [vmem:[#allocation3 + $0x38] sm:$0xff] }
 0x1c7   : > { %v484_v60 = vpop.permute.xlu0 %483  ;;  %v527_v61 = vpop.permute.xlu1 %526 }
 0x1c8   : > { %517 = vst [vmem:[#allocation3 + $0x60] sm:$0xf0] %v507_v38  ;;  %v489_v63 = vsel %vm485_vm13, %v482_v17, %v484_v60  ;;  %v499_v24 = vsel %vm1422_vm10, %v484_v60, 0.0  ;;  %v533_v1 = vsel %vm530_vm11, %v1282_v30, %v527_v61  ;;  %vm1443_vm13 = vcmp.ge.s32.totalorder %v262_v54, 1 }
 0x1c9   : > { %v498_v2 = vsel %vm1426_vm12, %v489_v63, 0.0  ;;  %v509_v3 = vrot.slane %v499_v24, 4  ;;  %v542_v4 = vsel %vm1372_vm6, %v533_v1, 0.0  ;;  %v616_v19 = vld [vmem:[#allocation3 + $0x30] sm:$0xff]  ;;  %v615_v32 = vld [vmem:[#allocation3 + $0x28] sm:$0xff]  ;;  %vm1105_vm6 = vmmov 0  }
 0x1ca   : > { %v508_v6 = vrot.slane %v498_v2, 4  ;;  %547 = vst [vmem:[#allocation3 + $0x88] sm:$0xf] %v542_v4 }
 0x1cb   : > { %v529_v8 = vpop.permute.xlu0 %528  ;;  %v1447_v30 = vpop.permute.xlu1 %370  ;;  %519 = vst.msk [vmem:[#allocation3 + $0x70] sm:$0xf0] %vm388_vm14, %v509_v3 }
 0x1cc   : > { %518 = vst [vmem:[#allocation3 + $0x68] sm:$0xf0] %v508_v6  ;;  %v534_v9 = vsel %vm530_vm11, %v527_v61, %v529_v8  ;;  %v544_v10 = vsel %vm1439_vm15, %v529_v8, 0.0  ;;  %v610_v26 = vld [vmem:[#allocation3] sm:$0xff]  ;;  %vm660_vm11 = vcmask 1041408  }
 0x1cd   : > { %v543_v11 = vsel %vm1443_vm13, %v534_v9, 0.0  ;;  %549 = vst.msk [vmem:[#allocation3 + $0x98] sm:$0xf] %vm194_vm0, %v544_v10  ;;  %v662_v44 = vsel %vm660_vm11, %v645_v43, 0 }
 0x1ce   : > { %548 = vst [vmem:[#allocation3 + $0x90] sm:$0xf] %v543_v11 }
 0x1cf   : > { %v369_v13 = vpop.permute.xlu0 %368  ;;  %v1456_v14 = vpop.permute.xlu1 %560  ;;  %v622_v59 = vld [vmem:[#allocation3 + $0x60] sm:$0xff] }
 0x1d0   : > { %v376_v15 = vsel %vm374_vm9, %v367_v49, %v369_v13  ;;  %v377_v16 = vsel %vm374_vm9, %v369_v13, %v1447_v30  ;;  %v567_v18 = vsel %vm564_vm1, %v1348_v62, %v1456_v14  ;;  %v635_v62 = vpack.c.bf16 %v615_v32, %v610_v26 }
 0x1d1   : > { %385 = vst [vmem:[#allocation3 + $0x8] sm:$0xf0] %v376_v15  ;;  %386 = vst [vmem:[#allocation3 + $0x10] sm:$0xf0] %v377_v16 }
 0x1d2   : > { %576 = vst [vmem:[#allocation3 + $0x88] sm:$0xf0] %v567_v18 }
 0x1d3   : > { %v1464_v21 = vpop.permute.xlu1 %585  ;;  %v623_v11 = vld [vmem:[#allocation3 + $0x68] sm:$0xff] }
 0x1d4   : > { %v592_v22 = vsel %vm589_vm4, %v1361_v12, %v1464_v21  ;;  %v620_v12 = vld [vmem:[#allocation3 + $0x50] sm:$0xff] }
 0x1d5   : > { %v601_v25 = vsel %vm1392_vm8, %v592_v22, 0.0  ;;  %v640_v42 = vpack.c.bf16 %v625_v36, %v620_v12 }
 0x1d6   : > { %606 = vst [vmem:[#allocation3 + $0xb0] sm:$0xf] %v601_v25 }
 0x1d8   : > { %v611_v27 = vld [vmem:[#allocation3 + $0x8] sm:$0xff]  ;;  %v612_v63 = vld [vmem:[#allocation3 + $0x10] sm:$0xff] }
 0x1d9   : > { %v636_v31 = vpack.c.bf16 %v616_v19, %v611_v27  ;;  %v637_v8 = vpack.c.bf16 %v617_v7, %v612_v63  ;;  %v627_v58 = vld [vmem:[#allocation3 + $0x88] sm:$0xff] }
 0x1da   : > { %v642_v16 = vpack.c.bf16 %v627_v58, %v622_v59 }
 0x1db   : > { %676 = vmatprep.subr.bf16.mxu0 %v636_v31 }
 0x1dc   : > { %677 = vmatpush1.bf16.msra.mxu0 %v635_v62 }
 0x1dd   : > { %678 = vmatprep.subr.bf16.mxu0 %v641_v34  ;;  %v632_v15 = vld [vmem:[#allocation3 + $0xb0] sm:$0xf] }
 0x1e0   : > { %679 = vmatpush1.bf16.msra.mxu0 %v640_v42 }
 0x1e1   : > { %899 = vmatprep.subr.msk.bf16.mxu0 %vm660_vm11, %v646_v35 }
 0x1e4   : > { %681 = vmatpush1.bf16.msra.mxu0 %v662_v44 }
 0x1e5   : > { %913 = vmatprep.subr.bf16.mxu0 %v1092_v0 }
 0x1e7   : > { %900 = vmatmul.mubr.msk.bf16.vlgmr.msra.gmra.mrb[0].mxu0 %vm656_vm2, %v1476_v45 }
 0x1e8   : > { %919 = vmatprep.mubr.msk.bf16.mxu0 %vm1105_vm6, %v1092_v0 }
 0x213   : > { %v434_v46 = vpop.permute.xlu0 %433 }
 0x214   : > { %v439_v47 = vsel %vm435_vm3, %v1368_v20, %v434_v46  ;;  %v449_v48 = vsel %vm1439_vm15, %v434_v46, 0.0 }
 0x215   : > { %v448_v49 = vsel %vm1443_vm13, %v439_v47, 0.0  ;;  %v459_v50 = vrot.slane %v449_v48, 4 }
 0x216   : > { %v458_v51 = vrot.slane %v448_v49, 4 }
 0x217   : > { %v338_v28 = vpop.permute.xlu0 %337  ;;  %469 = vst.msk [vmem:[#allocation3 + $0x48] sm:$0xf0] %vm388_vm14, %v459_v50 }
 0x218   : > { %468 = vst [vmem:[#allocation3 + $0x40] sm:$0xf0] %v458_v51  ;;  %v343_v52 = vsel %vm339_vm5, %v1376_v23, %v338_v28  ;;  %v353_v53 = vsel %vm1439_vm15, %v338_v28, 0.0 }
 0x219   : > { %v352_v20 = vsel %vm1443_vm13, %v343_v52, 0.0  ;;  %358 = vst.msk [vmem:[#allocation3 + $0x20] sm:$0xf] %vm194_vm0, %v353_v53 }
 0x21a   : > { %357 = vst [vmem:[#allocation3 + $0x18] sm:$0xf] %v352_v20 }
 0x21b   : > { %v404_v54 = vpop.permute.xlu0 %403 }
 0x21c   : > { %v409_v55 = vsel %vm405_vm7, %v1396_v39, %v404_v54  ;;  %v419_v17 = vsel %vm1422_vm10, %v404_v54, 0.0 }
 0x21d   : > { %v418_v56 = vsel %vm1426_vm12, %v409_v55, 0.0  ;;  %424 = vst.msk [vmem:[#allocation3 + $0x48] sm:$0xf] %vm194_vm0, %v419_v17 }
 0x21e   : > { %423 = vst [vmem:[#allocation3 + $0x40] sm:$0xf] %v418_v56 }
 0x21f   : > { %v373_v23 = vpop.permute.xlu0 %372 }
 0x220   : > { %v378_v57 = vsel %vm374_vm9, %v1447_v30, %v373_v23  ;;  %389 = vst.msk [vmem:[#allocation3 + $0x20] sm:$0xf0] %vm388_vm14, %v373_v23  ;;  %v624_v30 = vld [vmem:[#allocation3 + $0x70] sm:$0xff] }
 0x221   : > { %387 = vst [vmem:[#allocation3 + $0x18] sm:$0xf0] %v378_v57 }
 0x223   : > { %v563_v37 = vpop.permute.xlu0 %562 }
 0x224   : > { %v568_v39 = vsel %vm564_vm1, %v1456_v14, %v563_v37  ;;  %578 = vst.msk [vmem:[#allocation3 + $0x98] sm:$0xf0] %vm388_vm14, %v563_v37  ;;  %v619_v61 = vld [vmem:[#allocation3 + $0x48] sm:$0xff] }
 0x225   : > { %577 = vst [vmem:[#allocation3 + $0x90] sm:$0xf0] %v568_v39  ;;  %v618_v4 = vld [vmem:[#allocation3 + $0x40] sm:$0xff] }
 0x227   : > { %v588_v38 = vpop.permute.xlu0 %587  ;;  %v614_v60 = vld [vmem:[#allocation3 + $0x20] sm:$0xff] }
 0x228   : > { %v593_v24 = vsel %vm589_vm4, %v1464_v21, %v588_v38  ;;  %v603_v1 = vsel %vm1422_vm10, %v588_v38, 0.0  ;;  %v639_v2 = vpack.c.bf16 %v619_v61, %v614_v60  ;;  %v613_v3 = vld [vmem:[#allocation3 + $0x18] sm:$0xff]  ;;  %v647_v21 = vpack.c.bf16 %v632_v15, %v632_v15 }
 0x229   : > { %v602_v5 = vsel %vm1426_vm12, %v593_v24, 0.0  ;;  %608 = vst.msk [vmem:[#allocation3 + $0xc0] sm:$0xf] %vm194_vm0, %v603_v1  ;;  %v638_v6 = vpack.c.bf16 %v618_v4, %v613_v3  ;;  %vm802_vm0 = vcmask 523264  }
 0x22a   : > { %607 = vst [vmem:[#allocation3 + $0xb8] sm:$0xf] %v602_v5  ;;  %914 = vmatpush3.bf16.msra.mxu0 %v639_v2  ;;  %v668_v19 = vsel %vm660_vm11, %v647_v21, 0 }
 0x22b   : > { %717 = vmatprep.subr.bf16.mxu1 %v638_v6  ;;  %915 = vmatprep.subr.bf16.mxu0 %v1092_v0  ;;  %v629_v9 = vld [vmem:[#allocation3 + $0x98] sm:$0xff] }
 0x22c   : > { %718 = vmatpush1.bf16.msra.mxu1 %v637_v8  ;;  %v644_v10 = vpack.c.bf16 %v629_v9, %v624_v30  ;;  %v628_v13 = vld [vmem:[#allocation3 + $0x90] sm:$0xff] }
 0x22d   : > { %v643_v14 = vpack.c.bf16 %v628_v13, %v623_v11 }
 0x22e   : > { %916 = vmatpush3.bf16.msra.mxu0 %v644_v10 }
 0x22f   : > { %719 = vmatprep.subr.bf16.mxu1 %v643_v14  ;;  %917 = vmatprep.subr.bf16.mxu0 %v1092_v0 }
 0x230   : > { %720 = vmatpush1.bf16.msra.mxu1 %v642_v16  ;;  %v634_v18 = vld [vmem:[#allocation3 + $0xc0] sm:$0xf] }
 0x231   : > { %v633_v22 = vld [vmem:[#allocation3 + $0xb8] sm:$0xf]  ;;  %v649_v25 = vpack.c.bf16 %v634_v18, %v634_v18 }
 0x232   : > { %v648_v26 = vpack.c.bf16 %v633_v22, %v633_v22 }
 0x233   : > { %v674_v27 = vsel %vm660_vm11, %v649_v25, 0 }
 0x234   : > { %901 = vmatprep.subr.msk.bf16.mxu1 %vm660_vm11, %v648_v26  ;;  %918 = vmatpush3.bf16.msra.mxu0 %v674_v27 }
 0x235   : > { %722 = vmatpush1.bf16.msra.mxu1 %v668_v19  ;;  %v654_v0 = vpop.permute.xlu1 %653 }
 0x237   : > { %920 = vmatmul.mubr.msk.bf16.vlgmr.msra.gmra.mrb[4].mxu0 %vm656_vm2, %v1476_v45 }
 0x238   : > { %902 = vmatmul.mubr.msk.bf16.vlgmr.msra.gmra.mrb[0].mxu1 %vm656_vm2, %v1476_v45 }
 0x2ba   : > { %v710_v29 = vpop.f32.mrb[0].mxu0 }
 0x2bb   : > { %v712_v31 = vpop.f32.mrb[1].mxu0  ;;  %v711_v32 = vadd.f32 %v710_v29, %v654_v0 }
 0x2bc   : > { %v714_v62 = vpop.f32.mrb[2].mxu0  ;;  %v713_v33 = vadd.f32 %v712_v31, %v654_v0 }
 0x2bd   : > { %798 = vst [vmem:[%s189_s11] sm:$0xff] %v711_v32  ;;  %v715_v34 = vpop.f32.mrb[3].mxu0 }
 0x2be   : > { %799 = vst [vmem:[%s189_s11 + $0x8] sm:$0xff] %v713_v33 }
 0x30a   : > { %v792_v36 = vpop.f32.mrb[4].mxu0 }
 0x30b   : > { %v793_v40 = vadd.f32 %v792_v36, %v654_v0  ;;  %v751_v41 = vpop.f32.mrb[0].mxu1  ;;  %v921_v12 = vpop.f32.mrb[5].mxu0 }
 0x30c   : > { %v752_v42 = vadd.f32 %v751_v41, %v654_v0  ;;  %v753_v35 = vpop.f32.mrb[1].mxu1  ;;  %v795_v43 = vpop.f32.mrb[6].mxu0 }
 0x30d   : > { %803 = vst.msk [vmem:[%s189_s11 + $0x20] sm:$0xff] %vm802_vm0, %v793_v40  ;;  %v754_v44 = vadd.f32 %v753_v35, %v654_v0  ;;  %v755_v45 = vpop.f32.mrb[2].mxu1  ;;  %v922_v46 = vpop.f32.mrb[7].mxu0 }
 0x30e   : > { %800 = vst [vmem:[%s189_s11 + $0x10] sm:$0xff] %v752_v42  ;;  %v756_v47 = vpop.f32.mrb[3].mxu1 }
 0x30f   : > { %801 = vst [vmem:[%s189_s11 + $0x18] sm:$0xff] %v754_v44 }
 0x310   : > { %1034 = shalt.err (!%p1031_p2)
}
 0x311   : > { %s1035_s5 = scalar_lea.hbm %s1530_s8, 640  ;;  %s1039_s28 = scalar_lea.hbm %s1577_s3, 1280 }
 0x312   : > { %p1036_p4 = scmp.ne.s32.totalorder %s1530_s8, %s1035_s5  ;;  %p1040_p9 = scmp.lt.u32.totalorder %s1530_s8, %s1577_s3 }
 0x313   : > { %p1041_p1 = scmp.lt.u32.totalorder %s1039_s28, %s1035_s5  ;;  %p1043_p6 = scmp.lt.u32.totalorder %s1035_s5, %s1530_s8 }
 0x314   : > { %p1037_p5 = pnand %p1036_p4, %p1604_p11 }
 0x315   : > { %p1042_p3 = por %p1041_p1, %p1040_p9 }
 0x316   : > { %p1038_p7 = pneg %p1037_p5 }
 0x317   : > { %p1044_p12 = por %p1043_p6, %p1042_p3 }
 0x319   : > { %p1045_p13 = pnand %p1044_p12, %p1038_p7 }
 0x31b   : > { %1048 = shalt.err (!%p1045_p13)
}
 0x31c   : > { %927 = dma.vmem_to_hbm [thread:$0]  (%p1604_p11), %s1532_s6, 640, %s1530_s8, %s805_s16  }
 0x31d PF: > { %s831_s9 = sand.u32 1, %s1075_s12   ;;  %p1605_p8 = scmp.ne.s32.totalorder %s1582_s25, 0 }
 0x31e   : > { %p1606_p10 = scmp.ge.s32.totalorder %s1087_s15, 2  ;;  %s832_s10 = scalar_lea.sflag [#allocation6], %s831_s9 }
 0x320   : > { %p934_p0 = pnand %p1606_p10, %p1605_p8 }
 0x322   : > { %1070 = dma.done.wait (!%p934_p0), %s832_s10, 640  }
 0x323   : > { %1072 = vsyncadd (!%p934_p0), %s832_s10, 4294966656  ;;  %p16_p2 = scmp.ge.s32.totalorder %s1152_s18, 4   ;;  %s1607_s12 = smov %s1079_s13 }
 0x324   : > { %s1608_s13 = smov %s1083_s14  ;;  %s1609_s14 = smov %s1164_s21 }
 0x325   : > { %s1610_s15 = smov %s1152_s18  ;;  %18 = sbr.rel (!%p16_p2) target bundleno = 5 (0x5), region = 78 }
 0x32c   :  { %837 = vsyncpa [#allocation5], 1 }
 0x32d   :  { %839 = vsyncpa [#allocation5 + $0x1], 1 }
 0x32e   :  { %840 = vsyncpa [#allocation6], 1 }
 0x32f   :  { %842 = vsyncpa [#allocation6 + $0x1], 1 }

</bundles_post_ra>
